<compile_context>
chip_gen: v7x
topology: tpu7x:2x2x1
jax: 0.10.0
libtpu: 0.0.40
codegen_flags: <defaults>
</compile_context>

<pallas_src>
import jax
import jax.numpy as jnp
from jax.experimental import pallas as pl
from jax.experimental.pallas import tpu as pltpu


def _round_up(n: int, m: int) -> int:
    return ((n + m - 1) // m) * m


# ---------------------------------------------------------------------------
# Kernel: one collapsed RK4 step as a single fused matmul  o = z @ W
# ---------------------------------------------------------------------------
def _rk4_fused_kernel(z_ref, w_ref, o_ref):
    o_ref[...] = jnp.dot(
        z_ref[...], w_ref[...], preferred_element_type=jnp.float32
    ).astype(o_ref.dtype)


# ---------------------------------------------------------------------------
# One-time discretization: exact RK4 collapse for the linear/affine ODE.
# (Assumes zero-order-hold u across the four stages — matches the reference.)
# ---------------------------------------------------------------------------
def rk4_discretize(A, B, b, *, dt: float):
    nx = A.shape[0]
    eye = jnp.eye(nx, dtype=jnp.float32)
    M = dt * A.astype(jnp.float32)
    M2 = M @ M
    M3 = M2 @ M
    M4 = M3 @ M
    phi = eye + M + M2 / 2.0 + M3 / 6.0 + M4 / 24.0
    S = dt * (eye + M / 2.0 + M2 / 6.0 + M3 / 24.0)
    gamma = B.astype(jnp.float32) @ S
    c = b.astype(jnp.float32) @ S
    return phi, gamma, c


# ---------------------------------------------------------------------------
# Tile selection: 8-aligned divisor of the 8-aligned batch, VMEM-budgeted,
# and >=2 grid steps when the batch allows (v7x has 2 TensorCores).
# ---------------------------------------------------------------------------
def _pick_tile_b(padded_batch: int, k_dim: int, nx_pad: int,
                 *, vmem_budget_bytes: int = 24 << 20, cap: int = 1024) -> int:
    best = 8
    t = 8
    limit = min(padded_batch, cap)
    while t <= limit:
        if padded_batch % t == 0:
            n_tiles = padded_batch // t
            # double-buffered z+out tiles + (conservatively) double-buffered W
            vmem = (2 * t * (k_dim + nx_pad) + 2 * k_dim * nx_pad) * 4
            if vmem <= vmem_budget_bytes and (padded_batch < 16 or n_tiles >= 2):
                best = t
        t += 8
    return best


# ---------------------------------------------------------------------------
# Pallas launch: fused z@W, batch-tiled grid, resident fused weight block.
# ---------------------------------------------------------------------------
def rk4_apply(x, u, phi, gamma, c, *, tile_b: int | None = None):
    assert x.ndim == 2 and u.ndim == 2
    assert x.shape[0] == u.shape[0]
    batch, nx = x.shape
    nu = u.shape[1]
    assert phi.shape == (nx, nx)
    assert gamma.shape == (nu, nx)
    assert c.shape == (1, nx)

    out_dtype = x.dtype
    k_dim = nx + nu + 1                 # [x | u | 1]
    nx_pad = _round_up(nx, 128)         # lane-dense output stores

    # Fused weight  W = [Phi; Gamma; c]  padded with zero columns to nx_pad.
    w = jnp.concatenate(
        [phi.astype(jnp.float32), gamma.astype(jnp.float32),
         c.astype(jnp.float32)], axis=0)                      # (k_dim, nx)
    if nx_pad != nx:
        w = jnp.pad(w, ((0, 0), (0, nx_pad - nx)))            # (k_dim, nx_pad)

    # Batch tiling (8-aligned; avoid large padding copies by choosing a tile
    # that divides the 8-aligned batch when auto-selecting).
    if tile_b is not None:
        tile_b = max(8, (int(tile_b) // 8) * 8)
        padded_batch = _round_up(batch, tile_b)
    else:
        padded_batch = _round_up(batch, 8)
        tile_b = _pick_tile_b(padded_batch, k_dim, nx_pad)

    if padded_batch != batch:
        pad = padded_batch - batch
        x = jnp.pad(x, ((0, pad), (0, 0)))
        u = jnp.pad(u, ((0, pad), (0, 0)))

    z = jnp.concatenate(
        [x.astype(jnp.float32), u.astype(jnp.float32),
         jnp.ones((padded_batch, 1), jnp.float32)], axis=1)   # (padded, k_dim)

    n_tiles = padded_batch // tile_b

    vmem_needed = (2 * tile_b * (k_dim + nx_pad) + 2 * k_dim * nx_pad) * 4
    vmem_limit = int(min(64 << 20, max(4 << 20, 2 * vmem_needed)))

    cost = pl.CostEstimate(
        flops=2 * padded_batch * k_dim * nx_pad,
        transcendentals=0,
        bytes_accessed=4 * (padded_batch * k_dim
                            + k_dim * nx_pad
                            + padded_batch * nx_pad),
    )

    out = pl.pallas_call(
        _rk4_fused_kernel,
        out_shape=jax.ShapeDtypeStruct((padded_batch, nx_pad), out_dtype),
        grid=(n_tiles,),
        in_specs=[
            pl.BlockSpec((tile_b, k_dim), lambda i: (i, 0)),   # z: tiled over batch
            pl.BlockSpec((k_dim, nx_pad), lambda i: (0, 0)),   # W: resident (constant)
        ],
        out_specs=pl.BlockSpec((tile_b, nx_pad), lambda i: (i, 0)),
        compiler_params=pltpu.CompilerParams(
            dimension_semantics=("parallel",),   # shard batch tiles across TCs (v7x)
            vmem_limit_bytes=vmem_limit,
        ),
        cost_estimate=cost,
    )(z, w)

    if padded_batch != batch or nx_pad != nx:
        out = out[:batch, :nx]
    return out


def rk4_step(x, u, A, B, b, *, dt: float, tile_b: int | None = None):
    """One RK4 step of xdot = x@A + u@B + b.  x: (batch, nx), u: (batch, nu)."""
    phi, gamma, c = rk4_discretize(A, B, b, dt=dt)
    return rk4_apply(x, u, phi, gamma, c, tile_b=tile_b)


# ---------------------------------------------------------------------------
# Pure-JAX reference: the literal 4-stage RK4 from the PyTorch module.
# ---------------------------------------------------------------------------
def rk4_reference(x, u, A, B, b, *, dt: float):
    def ode(xx):
        return xx @ A + u @ B + b

    k1 = ode(x)
    k2 = ode(x + 0.5 * dt * k1)
    k3 = ode(x + 0.5 * dt * k2)
    k4 = ode(x + dt * k3)
    return x + dt / 6.0 * (k1 + 2.0 * k2 + 2.0 * k3 + k4)


if __name__ == "__main__":
    batch = 8
    state_dim = 8
    control_dim = 4
    dt = 0.02

    key = jax.random.PRNGKey(0)
    kx, ku, kA, kB, kb = jax.random.split(key, 5)

    x = jax.random.normal(kx, (batch, state_dim), dtype=jnp.float32)
    u = jax.random.normal(ku, (batch, control_dim), dtype=jnp.float32)

    # Deterministic synthetic ODE parameters (stable-ish linear dynamics).
    A = 0.1 * jax.random.normal(kA, (state_dim, state_dim), dtype=jnp.float32)
    B = 0.1 * jax.random.normal(kB, (control_dim, state_dim), dtype=jnp.float32)
    b = 0.01 * jax.random.normal(kb, (1, state_dim), dtype=jnp.float32)

    # Hoist the one-time discretization out of the per-step path.
    phi, gamma, c = rk4_discretize(A, B, b, dt=dt)

    # Single-tile path (batch fits in one grid step).
    out = rk4_apply(x, u, phi, gamma, c)
    out = jax.block_until_ready(out)
    ref = rk4_reference(x, u, A, B, b, dt=dt)
    assert out.shape == (batch, state_dim)
    assert jnp.allclose(out, ref, atol=1e-5, rtol=1e-5), "mismatch vs reference"

    # Multi-tile grid path: auto tile selection (>=2 tiles -> both TCs on v7x).
    big_batch = 32
    xb = jax.random.normal(kx, (big_batch, state_dim), dtype=jnp.float32)
    ub = jax.random.normal(ku, (big_batch, control_dim), dtype=jnp.float32)
    out_b = rk4_apply(xb, ub, phi, gamma, c)
    out_b = jax.block_until_ready(out_b)
    ref_b = rk4_reference(xb, ub, A, B, b, dt=dt)
    assert out_b.shape == (big_batch, state_dim)
    assert jnp.allclose(out_b, ref_b, atol=1e-5, rtol=1e-5), "mismatch (auto-tiled)"

    # Explicit user tile_b path (clamped to a multiple of 8).
    out_c = rk4_step(xb, ub, A, B, b, dt=dt, tile_b=8)
    out_c = jax.block_until_ready(out_c)
    assert jnp.allclose(out_c, ref_b, atol=1e-5, rtol=1e-5), "mismatch (tile_b=8)"

    print("KERNEL_OK")
</pallas_src>

<mosaic_0001>
module attributes {stable_mosaic.version = 11 : i64} {
  func.func @_rk4_fused_kernel(%arg0: i32, %arg1: memref<8x13xf32, #tpu.memory_space<vmem>>, %arg2: memref<13x128xf32, #tpu.memory_space<vmem>>, %arg3: memref<8x128xf32, #tpu.memory_space<vmem>>) attributes {dimension_semantics = [#tpu.dimension_semantics<parallel>], iteration_bounds = array<i64: 1>, scalar_prefetch = 0 : i64, scratch_operands = 0 : i64, tpu.core_type = #tpu.core_type<tc>, window_params = [{transform_indices = @transform_0, window_bounds = array<i64: 8, 13>}, {pipeline_mode = #tpu.pipeline_mode<synchronous>, transform_indices = @transform_1, window_bounds = array<i64: 13, 128>}, {transform_indices = @transform_2, window_bounds = array<i64: 8, 128>}]} {
    %c0 = arith.constant 0 : index
    %c0_0 = arith.constant 0 : index
    %0 = vector.load %arg1[%c0, %c0_0] : memref<8x13xf32, #tpu.memory_space<vmem>>, vector<8x13xf32>
    %c0_1 = arith.constant 0 : index
    %c0_2 = arith.constant 0 : index
    %1 = vector.load %arg2[%c0_1, %c0_2] : memref<13x128xf32, #tpu.memory_space<vmem>>, vector<13x128xf32>
    %cst = arith.constant dense<0.000000e+00> : vector<8x128xf32>
    %2 = tpu.matmul %0, %1, %cst {dimension_numbers = #tpu.dot_dimension_numbers<[1], [0], [0], [1], [0, 0, 1, 1], [], []>} : vector<8x13xf32>, vector<13x128xf32>, vector<8x128xf32> -> vector<8x128xf32>
    %c0_3 = arith.constant 0 : index
    %c0_4 = arith.constant 0 : index
    %3 = vector.load %arg3[%c0_3, %c0_4] : memref<8x128xf32, #tpu.memory_space<vmem>>, vector<8x128xf32>
    tpu.vector_store %arg3[%c0_3, %c0_4], %2 {strides = array<i32>} : memref<8x128xf32, #tpu.memory_space<vmem>>, vector<8x128xf32>,
    return
  }
  func.func @transform_0(%arg0: i32) -> (i32, i32) {
    %c0_i32 = arith.constant 0 : i32
    %c0_i32_0 = arith.constant 0 : i32
    return %arg0, %c0_i32 : i32, i32
  }
  func.func @transform_1(%arg0: i32) -> (i32, i32) {
    %c0_i32 = arith.constant 0 : i32
    %c0_i32_0 = arith.constant 0 : i32
    %c0_i32_1 = arith.constant 0 : i32
    return %c0_i32, %c0_i32_0 : i32, i32
  }
  func.func @transform_2(%arg0: i32) -> (i32, i32) {
    %c0_i32 = arith.constant 0 : i32
    %c0_i32_0 = arith.constant 0 : i32
    return %arg0, %c0_i32 : i32, i32
  }
}

</mosaic_0001>

<bundles_post_ra>
// kernel: tpu_custom_call.1
= control target key start
LH: loop header
LB: loop body
LE: loop exit
PB: predicated region body
PF: predicated region fallthrough
CT: control target
= control target key end

     0   :  { %7 = vsyncpa [#allocation3], 0  ;;  %s300_s0 = inlined_call_operand.hbm [shape: f32[8,13], index: 0, kind: input, shape index: {}]   ;;  %s301_s1 = inlined_call_operand.hbm [shape: f32[13,128], index: 1, kind: input, shape index: {}]   ;;  %s302_s2 = inlined_call_operand.hbm [shape: f32[8,128], index: 2, kind: output, shape index: {}]  }
   0x1   :  { %8 = vsyncpa [#allocation6], 0 }
   0x2   :  { %9 = vsyncpa [#allocation4], 0  ;;  %s233_s9 = smov [#allocation2]   ;;  %s234_s11 = smov [#allocation5]  }
   0x3   :  { %s16_s10 = sshll.u32 %s233_s9, 4  ;;  %s25_s12 = sshll.u32 %s234_s11, 4  ;;  %s17_s10 = int_to_ptr.vmem [resolvable:$true] %s16_s10  ;;  %s257_s12 = int_to_ptr.vmem [resolvable:$true] %s25_s12 }
   0x4   :  { %s161_s15 = scalar_lea.hbm %s300_s0, 128 }
   0x5   :  { %p162_p0 = scmp.ne.s32.totalorder %s300_s0, %s161_s15  ;;  %p165_p1 = scmp.lt.u32.totalorder %s161_s15, %s300_s0 }
   0x7   :  { %p167_p2 = pnand %p165_p1, %p162_p0 }
   0x9   :  { %170 = shalt.err (!%p167_p2)
}
   0xa   :  { %s171_s20 = scalar_lea.vmem %s17_s10, 128  ;;  %p176_p4 = scmp.lt.s32.totalorder %s17_s10, %s17_s10 }
   0xb   :  { %p172_p3 = scmp.ne.s32.totalorder %s17_s10, %s171_s20  ;;  %p177_p5 = scmp.lt.s32.totalorder %s171_s20, %s171_s20 }
   0xd   :  { %p178_p6 = por %p177_p5, %p176_p4 }
   0xf   :  { %p179_p7 = pnand %p178_p6, %p172_p3 }
  0x11   :  { %182 = shalt.err (!%p179_p7)
}
  0x12   :  { %19 = dma.hbm_to_vmem [thread:$0]  %s300_s0, 128, %s17_s10, [#allocation3]  }
  0x13   :  { %s183_s25 = scalar_lea.hbm %s301_s1, 256 }
  0x14   :  { %p184_p8 = scmp.ne.s32.totalorder %s301_s1, %s183_s25  ;;  %p187_p9 = scmp.lt.u32.totalorder %s183_s25, %s301_s1 }
  0x16   :  { %p189_p10 = pnand %p187_p9, %p184_p8 }
  0x18   :  { %192 = shalt.err (!%p189_p10)
}
  0x19   :  { %s193_s30 = scalar_lea.vmem %s257_s12, 256  ;;  %p198_p12 = scmp.lt.s32.totalorder %s257_s12, %s257_s12 }
  0x1a   :  { %p194_p11 = scmp.ne.s32.totalorder %s257_s12, %s193_s30  ;;  %p199_p13 = scmp.lt.s32.totalorder %s193_s30, %s193_s30 }
  0x1c   :  { %p200_p0 = por %p199_p13, %p198_p12 }
  0x1e   :  { %p201_p1 = pnand %p200_p0, %p194_p11 }
  0x20   :  { %204 = shalt.err (!%p201_p1)
}
  0x21   :  { %s235_s0 = smov 128   ;;  %s236_s3 = smov 8  }
  0x22   :  { %31 = dma.hbm_to_vmem [thread:$0]  %s301_s1, 256, %s257_s12, [#allocation6], %s235_s0, %s235_s0, %s236_s3  }
  0x23   :  { %227 = dma.done.wait [#allocation3], 128  }
  0x24   :  { %228 = vsyncadd [#allocation3], 4294967168 }
  0x25   :  { %229 = dma.done.wait [#allocation6], 256  }
  0x26   :  { %230 = vsyncadd [#allocation6], 4294967040  ;;  %v237_v0 = vmov 0.0|0.0   ;;  %vm238_vm0 = vmmov 0   ;;  %v239_v1 = vmov 0.0   ;;  %vm45_vm1 = vcmask 1044480  }
  0x27   :  { %148 = vmatprep.subr.bf16.mxu0 %v237_v0  ;;  %145 = vmatprep.mubr.msk.f32.mxu0 %vm238_vm0, %v239_v1  ;;  %v39_v2 = vld [vmem:[#allocation5] sm:$0xff]  ;;  %v40_v3 = vld [vmem:[#allocation5 + $0x8] sm:$0x1f]  ;;  %vm240_vm2 = vmmov 1   ;;  %v38_v5 = vld [vmem:[#allocation2] sm:$0xff]  ;;  %vm41_vm4 = vcmask 105472  }
  0x28   :  { %vm150_vm3 = vmpackc.low %vm45_vm1, %vm240_vm2  ;;  %v149_v4 = vpack.c.bf16 %v40_v3, %v39_v2  ;;  %s241_s1 = smov [#allocation7]  }
  0x29   :  { %s126_s6 = sshll.u32 %s241_s1, 4  ;;  %s127_s6 = int_to_ptr.vmem [resolvable:$true] %s126_s6 }
  0x2a   :  { %151 = vmatpush3.bf16.msk.msra.mxu0 %vm150_vm3, %v149_v4  ;;  %s205_s7 = scalar_lea.vmem %s127_s6, 128  ;;  %p210_p3 = scmp.lt.s32.totalorder %s127_s6, %s127_s6 }
  0x2b   :  { %p206_p2 = scmp.ne.s32.totalorder %s127_s6, %s205_s7  ;;  %p211_p4 = scmp.lt.s32.totalorder %s205_s7, %s205_s7 }
  0x2d   :  { %146 = vmatmul.mubr.msk.f32.vlgmr.msra.gmra.mrb[0].mxu0 %vm41_vm4, %v38_v5  ;;  %p212_p5 = por %p211_p4, %p210_p3 }
  0x2f   :  { %p213_p6 = pnand %p212_p5, %p206_p2 }
 0x100   :  { %v115_v6 = vpop.f32.mrb[0].mxu0 }
 0x101   :  { %119 = vst [vmem:[#allocation7] sm:$0xff] %v115_v6  ;;  %v147_v7 = vpop.f32.mrb[1].mxu0 }
 0x102   :  { %216 = shalt.err (!%p213_p6)
}
 0x103   :  { %s217_s10 = scalar_lea.hbm %s302_s2, 128 }
 0x104   :  { %p218_p7 = scmp.ne.s32.totalorder %s302_s2, %s217_s10  ;;  %p221_p8 = scmp.lt.u32.totalorder %s217_s10, %s302_s2 }
 0x106   :  { %p223_p9 = pnand %p221_p8, %p218_p7 }
 0x108   :  { %226 = shalt.err (!%p223_p9)
}
 0x109   :  { %129 = dma.vmem_to_hbm [thread:$0]  %s127_s6, 128, %s302_s2, [#allocation4]  }
 0x10a   :  { %231 = dma.done.wait [#allocation4], 128  }
 0x10b   :  { %232 = vsyncadd [#allocation4], 4294967168 }
 0x10c   :  { %133 = vsyncpa [#allocation3], 1 }
 0x10d   :  { %134 = vsyncpa [#allocation6], 1 }
 0x10e   :  { %135 = vsyncpa [#allocation4], 1 }

</bundles_post_ra>
